<compile_context>
chip_gen: v6e
topology: v6e:2x2x1
jax: 0.10.0
libtpu: 0.0.40
codegen_flags: <defaults>
</compile_context>

<pallas_src>
import functools

import jax
import jax.numpy as jnp
from jax.experimental import pallas as pl
from jax.experimental.pallas import tpu as pltpu


def _focal_loss_kernel(preds_ref, labels_ref, out_ref, *, gamma, alpha):
    lbl = labels_ref[...]                          # (g, 128) int32
    C = preds_ref.shape[0]
    g = preds_ref.shape[1]

    # Pass 1: per-row max over the (small, unrolled) class axis.
    # Cast per class at use: no full (C, g, 128) f32 copy is materialized.
    m = preds_ref[0].astype(jnp.float32)
    for c in range(1, C):
        m = jnp.maximum(m, preds_ref[c].astype(jnp.float32))

    # Pass 2: softmax denominator + compare/select gather of the target class.
    # The exp(p[c]-m) terms are reused for the target numerator, so pt needs no
    # second exp (EUP is the saturating VLIW slot once tiles are large).
    s = jnp.zeros_like(m)
    num_t = jnp.zeros_like(m)
    logit_t = jnp.zeros_like(m)
    alpha_t = jnp.zeros_like(m)
    for c in range(C):
        pc = preds_ref[c].astype(jnp.float32)
        e = jnp.exp(pc - m)
        hit = lbl == c                             # padded rows (label==C) match nothing
        s = s + e
        num_t = jnp.where(hit, e, num_t)
        logit_t = jnp.where(hit, pc, logit_t)
        alpha_t = jnp.where(hit, jnp.float32(alpha[c]), alpha_t)

    logpt = (logit_t - m) - jnp.log(s)             # log p_t (<= 0 up to rounding)
    pt = num_t / s                                 # reuses exps; exact divide (accuracy)
    # Clamp the pt > 1 rounding epsilon.  Microscopically different from the
    # reference (1-pt)**gamma which would square a tiny negative; benign.
    d = jnp.maximum(1.0 - pt, 0.0)

    gi = int(gamma)
    if float(gamma) == float(gi) and 0 <= gi <= 8:
        mod = jnp.ones_like(d)                     # integer gamma: VPU multiply chain
        for _ in range(gi):
            mod = mod * d
    else:                                          # general gamma, guarded so d == 0 can't NaN
        mod = jnp.where(d > 0.0,
                        jnp.exp(gamma * jnp.log(jnp.maximum(d, 1e-30))),
                        jnp.zeros_like(d))

    loss = alpha_t * mod * (-logpt)                # (g, 128) per-row focal loss
    # Fold this tile's rows into one (8, 128) vreg of partial sums.
    out_ref[...] = loss.reshape(g // 8, 8, 128).sum(axis=0)[None]


def _round_up(x, m):
    return (x + m - 1) // m * m


def _build_alpha(alpha, num_classes):
    """Replicates FocalLoss.__init__: scalar alpha -> [a, 1-a, ..., 1-a]."""
    if isinstance(alpha, (list, tuple)):
        assert len(alpha) == num_classes
        return tuple(float(v) for v in alpha)
    assert alpha < 1
    return (float(alpha),) + (float(1.0 - alpha),) * (num_classes - 1)


_VMEM_LIMIT_BYTES = 48 * 1024 * 1024   # < v7x's 64 MiB physical; fine on v5e/v6e


def _choose_tm(M, C, dsize):
    """Pick the per-step row tile from a real VMEM budget (not a fixed cap)."""
    # Per-row VMEM: double-buffered preds + double-buffered int32 labels +
    # ~10 live (rows,) f32 intermediates in the kernel body.
    bytes_per_row = 2 * C * dsize + 2 * 4 + 10 * 4
    budget = 28 * 1024 * 1024                      # headroom under the 48 MiB limit
    tm = (budget // bytes_per_row) // 1024 * 1024
    tm = max(1024, min(tm, 128 * 1024))            # diminishing returns past ~128K rows
    m_ceil = _round_up(M, 1024)
    if m_ceil <= tm:
        return m_ceil                              # one tile covers the whole problem
    # Large problem: keep >= 2 (preferably even) grid steps so the ("parallel",)
    # axis can shard across v7x's two TensorCores.
    nt = -(-m_ceil // tm)
    if nt > 1 and nt % 2:
        nt += 1
    return max(1024, _round_up(-(-m_ceil // nt), 1024))


@functools.partial(jax.jit,
                   static_argnames=("alpha_tab", "gamma", "reduction", "tile_rows"))
def _focal_loss_impl(preds, labels, alpha_tab, gamma, reduction, tile_rows):
    C = preds.shape[-1]
    preds2d = preds.reshape(-1, C)                 # keep input dtype; cast in-kernel
    labels1d = labels.reshape(-1).astype(jnp.int32)
    M = preds2d.shape[0]

    dsize = jnp.dtype(preds2d.dtype).itemsize
    tm = tile_rows if tile_rows is not None else _choose_tm(M, C, dsize)
    g = tm // 128
    M_pad = _round_up(M, tm)
    num_tiles = M_pad // tm

    # Lane-dense class-major relayout, fused with the kernel under one jit so
    # XLA performs pad+transpose in a single pass.  Padded rows get the
    # out-of-range sentinel label C and contribute exactly zero loss.
    # TODO(synk): producing class-major logits upstream (flipping the producing
    # matmul's output layout) would remove this extra HBM round-trip entirely.
    preds_pad = jnp.pad(preds2d, ((0, M_pad - M), (0, 0)))
    labels_pad = jnp.pad(labels1d, (0, M_pad - M), constant_values=C)
    preds_lane = preds_pad.T.reshape(C, M_pad // 128, 128)
    labels_lane = labels_pad.reshape(M_pad // 128, 128)

    kernel = functools.partial(_focal_loss_kernel, gamma=float(gamma), alpha=alpha_tab)

    partials = pl.pallas_call(
        kernel,
        out_shape=jax.ShapeDtypeStruct((num_tiles, 8, 128), jnp.float32),
        grid_spec=pltpu.PrefetchScalarGridSpec(
            num_scalar_prefetch=0,
            grid=(num_tiles,),
            in_specs=[
                pl.BlockSpec((C, g, 128), lambda i: (0, i, 0)),   # preds tile
                pl.BlockSpec((g, 128), lambda i: (i, 0)),         # labels tile
            ],
            out_specs=pl.BlockSpec((1, 8, 128), lambda i: (i, 0, 0)),
        ),
        compiler_params=pltpu.CompilerParams(
            dimension_semantics=("parallel",),      # independent tiles: megacore-shardable
            vmem_limit_bytes=_VMEM_LIMIT_BYTES,
        ),
    )(preds_lane, labels_lane)

    total = jnp.sum(partials)
    if reduction == "mean":
        return total / jnp.float32(M)
    return total                                    # "sum"


def focal_loss(preds, labels, alpha=0.25, gamma=2.0, reduction="mean",
               tile_rows=None):
    """Pallas-TPU FocalLoss.forward.  preds: [B,N,C] or [B,C]; labels: [B,N] or [B]."""
    if reduction not in ("mean", "sum"):
        # TODO(synk): reduction='none' (unreduced [1, M] loss) is not implemented
        # in this scalar-reduction kernel; it would need a per-row output layout.
        raise NotImplementedError(reduction)
    if tile_rows is not None:
        assert tile_rows % 1024 == 0, "tile_rows must be a multiple of 8*128"
    C = preds.shape[-1]
    alpha_tab = _build_alpha(alpha, C)
    return _focal_loss_impl(preds, labels, alpha_tab, float(gamma), reduction,
                            tile_rows)


def _reference_focal_loss(preds, labels, alpha, gamma=2.0, reduction="mean"):
    C = preds.shape[-1]
    p = preds.reshape(-1, C).astype(jnp.float32)
    y = labels.reshape(-1).astype(jnp.int32)
    logsoft = jax.nn.log_softmax(p, axis=1)
    logpt = jnp.take_along_axis(logsoft, y[:, None], axis=1)[:, 0]
    pt = jnp.exp(logpt)
    a = jnp.asarray(_build_alpha(alpha, C), jnp.float32)[y]
    loss = a * jnp.power(1.0 - pt, gamma) * (-logpt)
    if reduction == "mean":
        return loss.mean()
    if reduction == "sum":
        return loss.sum()
    raise NotImplementedError(reduction)


if __name__ == "__main__":
    key = jax.random.PRNGKey(0)
    k1, k2, k3, k4 = jax.random.split(key, 4)

    # Check 1: module defaults (alpha=0.25, gamma=2, num_classes=2, reduction='mean'),
    # detection-style preds [B, N, C] with labels [B, N].
    B, N, C = 2, 8, 2
    preds = jax.random.normal(k1, (B, N, C), dtype=jnp.float32)
    labels = jax.random.randint(k2, (B, N), 0, C, dtype=jnp.int32)
    out = jax.block_until_ready(focal_loss(preds, labels, alpha=0.25, gamma=2.0))
    ref = _reference_focal_loss(preds, labels, 0.25, gamma=2.0)
    assert jnp.allclose(out, ref, rtol=1e-5, atol=1e-6), (out, ref)

    # Check 2: list alpha, C=4, auto tile sizing (single large tile + padding).
    B2, N2, C2 = 8, 700, 4
    alpha_list = [0.1, 0.2, 0.3, 0.4]
    preds2 = jax.random.normal(k3, (B2, N2, C2), dtype=jnp.float32)
    labels2 = jax.random.randint(k4, (B2, N2), 0, C2, dtype=jnp.int32)
    out2 = jax.block_until_ready(focal_loss(preds2, labels2, alpha=alpha_list, gamma=2.0))
    ref2 = _reference_focal_loss(preds2, labels2, alpha_list, gamma=2.0)
    assert jnp.allclose(out2, ref2, rtol=1e-4, atol=1e-5), (out2, ref2)

    # Check 3: force a small tile to exercise the multi-tile grid path
    # (6 grid steps), plus 'sum' reduction.
    out3 = jax.block_until_ready(
        focal_loss(preds2, labels2, alpha=alpha_list, gamma=2.0,
                   reduction="sum", tile_rows=1024))
    ref3 = _reference_focal_loss(preds2, labels2, alpha_list, gamma=2.0,
                                 reduction="sum")
    assert jnp.allclose(out3, ref3, rtol=1e-4, atol=1e-4), (out3, ref3)

    print("KERNEL_OK")
</pallas_src>

<mosaic_0001>
module attributes {stable_mosaic.version = 11 : i64} {
  func.func @_focal_loss_kernel(%arg0: i32, %arg1: memref<2x8x128xf32, #tpu.memory_space<vmem>>, %arg2: memref<8x128xi32, #tpu.memory_space<vmem>>, %arg3: memref<1x8x128xf32, #tpu.memory_space<vmem>>) attributes {dimension_semantics = [#tpu.dimension_semantics<parallel>], iteration_bounds = array<i64: 1>, scalar_prefetch = 0 : i64, scratch_operands = 0 : i64, tpu.core_type = #tpu.core_type<tc>, window_params = [{transform_indices = @transform_0, window_bounds = array<i64: 2, 8, 128>}, {transform_indices = @transform_1, window_bounds = array<i64: 8, 128>}, {transform_indices = @transform_2, window_bounds = array<i64: 1, 8, 128>}]} {
    %c0 = arith.constant 0 : index
    %c0_0 = arith.constant 0 : index
    %0 = vector.load %arg2[%c0, %c0_0] : memref<8x128xi32, #tpu.memory_space<vmem>>, vector<8x128xi32>
    %c0_1 = arith.constant 0 : index
    %c0_2 = arith.constant 0 : index
    %c0_3 = arith.constant 0 : index
    %1 = vector.load %arg1[%c0_1, %c0_2, %c0_3] : memref<2x8x128xf32, #tpu.memory_space<vmem>>, vector<1x8x128xf32>
    %2 = vector.shape_cast %1 : vector<1x8x128xf32> to vector<8x128xf32>
    %c1 = arith.constant 1 : index
    %c0_4 = arith.constant 0 : index
    %c0_5 = arith.constant 0 : index
    %3 = vector.load %arg1[%c1, %c0_4, %c0_5] : memref<2x8x128xf32, #tpu.memory_space<vmem>>, vector<1x8x128xf32>
    %4 = vector.shape_cast %3 : vector<1x8x128xf32> to vector<8x128xf32>
    %5 = arith.maximumf %2, %4 : vector<8x128xf32>
    %cst = arith.constant 0.000000e+00 : f32
    %6 = vector.broadcast %cst : f32 to vector<8x128xf32>
    %cst_6 = arith.constant 0.000000e+00 : f32
    %7 = vector.broadcast %cst_6 : f32 to vector<8x128xf32>
    %cst_7 = arith.constant 0.000000e+00 : f32
    %8 = vector.broadcast %cst_7 : f32 to vector<8x128xf32>
    %cst_8 = arith.constant 0.000000e+00 : f32
    %9 = vector.broadcast %cst_8 : f32 to vector<8x128xf32>
    %c0_9 = arith.constant 0 : index
    %c0_10 = arith.constant 0 : index
    %c0_11 = arith.constant 0 : index
    %10 = vector.load %arg1[%c0_9, %c0_10, %c0_11] : memref<2x8x128xf32, #tpu.memory_space<vmem>>, vector<1x8x128xf32>
    %11 = vector.shape_cast %10 : vector<1x8x128xf32> to vector<8x128xf32>
    %12 = arith.subf %11, %5 : vector<8x128xf32>
    %13 = math.exp %12 : vector<8x128xf32>
    %c0_i32 = arith.constant 0 : i32
    %14 = vector.broadcast %c0_i32 : i32 to vector<8x128xi32>
    %15 = arith.cmpi eq, %0, %14 : vector<8x128xi32>
    %16 = arith.addf %6, %13 : vector<8x128xf32>
    %17 = arith.select %15, %13, %7 : vector<8x128xi1>, vector<8x128xf32>
    %18 = arith.select %15, %11, %8 : vector<8x128xi1>, vector<8x128xf32>
    %cst_12 = arith.constant 2.500000e-01 : f32
    %19 = vector.broadcast %cst_12 : f32 to vector<8x128xf32>
    %20 = arith.select %15, %19, %9 : vector<8x128xi1>, vector<8x128xf32>
    %c1_13 = arith.constant 1 : index
    %c0_14 = arith.constant 0 : index
    %c0_15 = arith.constant 0 : index
    %21 = vector.load %arg1[%c1_13, %c0_14, %c0_15] : memref<2x8x128xf32, #tpu.memory_space<vmem>>, vector<1x8x128xf32>
    %22 = vector.shape_cast %21 : vector<1x8x128xf32> to vector<8x128xf32>
    %23 = arith.subf %22, %5 : vector<8x128xf32>
    %24 = math.exp %23 : vector<8x128xf32>
    %c1_i32 = arith.constant 1 : i32
    %25 = vector.broadcast %c1_i32 : i32 to vector<8x128xi32>
    %26 = arith.cmpi eq, %0, %25 : vector<8x128xi32>
    %27 = arith.addf %16, %24 : vector<8x128xf32>
    %28 = arith.select %26, %24, %17 : vector<8x128xi1>, vector<8x128xf32>
    %29 = arith.select %26, %22, %18 : vector<8x128xi1>, vector<8x128xf32>
    %cst_16 = arith.constant 7.500000e-01 : f32
    %30 = vector.broadcast %cst_16 : f32 to vector<8x128xf32>
    %31 = arith.select %26, %30, %20 : vector<8x128xi1>, vector<8x128xf32>
    %32 = arith.subf %29, %5 : vector<8x128xf32>
    %33 = math.log %27 : vector<8x128xf32>
    %34 = arith.subf %32, %33 : vector<8x128xf32>
    %35 = arith.divf %28, %27 : vector<8x128xf32>
    %cst_17 = arith.constant 1.000000e+00 : f32
    %36 = vector.broadcast %cst_17 : f32 to vector<8x128xf32>
    %37 = arith.subf %36, %35 : vector<8x128xf32>
    %cst_18 = arith.constant 0.000000e+00 : f32
    %38 = vector.broadcast %cst_18 : f32 to vector<8x128xf32>
    %39 = arith.maximumf %37, %38 : vector<8x128xf32>
    %cst_19 = arith.constant 1.000000e+00 : f32
    %40 = vector.broadcast %cst_19 : f32 to vector<8x128xf32>
    %41 = arith.mulf %40, %39 : vector<8x128xf32>
    %42 = arith.mulf %41, %39 : vector<8x128xf32>
    %43 = arith.mulf %31, %42 : vector<8x128xf32>
    %cst_20 = arith.constant 0.000000e+00 : f32
    %44 = vector.broadcast %cst_20 : f32 to vector<8x128xf32>
    %45 = arith.subf %44, %34 : vector<8x128xf32>
    %46 = arith.mulf %43, %45 : vector<8x128xf32>
    %47 = vector.shape_cast %46 : vector<8x128xf32> to vector<1x8x128xf32>
    %cst_21 = arith.constant dense<0.000000e+00> : vector<8x128xf32>
    %48 = vector.multi_reduction <add>, %47, %cst_21 [0] : vector<1x8x128xf32> to vector<8x128xf32>
    %49 = vector.shape_cast %48 : vector<8x128xf32> to vector<1x8x128xf32>
    %c0_22 = arith.constant 0 : index
    %c0_23 = arith.constant 0 : index
    %c0_24 = arith.constant 0 : index
    %50 = vector.load %arg3[%c0_22, %c0_23, %c0_24] : memref<1x8x128xf32, #tpu.memory_space<vmem>>, vector<1x8x128xf32>
    tpu.vector_store %arg3[%c0_22, %c0_23, %c0_24], %49 {strides = array<i32>} : memref<1x8x128xf32, #tpu.memory_space<vmem>>, vector<1x8x128xf32>,
    return
  }
  func.func @transform_0(%arg0: i32) -> (i32, i32, i32) {
    %c0_i32 = arith.constant 0 : i32
    %c0_i32_0 = arith.constant 0 : i32
    %c0_i32_1 = arith.constant 0 : i32
    return %c0_i32, %arg0, %c0_i32_0 : i32, i32, i32
  }
  func.func @transform_1(%arg0: i32) -> (i32, i32) {
    %c0_i32 = arith.constant 0 : i32
    %c0_i32_0 = arith.constant 0 : i32
    return %arg0, %c0_i32 : i32, i32
  }
  func.func @transform_2(%arg0: i32) -> (i32, i32, i32) {
    %c0_i32 = arith.constant 0 : i32
    %c0_i32_0 = arith.constant 0 : i32
    %c0_i32_1 = arith.constant 0 : i32
    return %arg0, %c0_i32, %c0_i32_0 : i32, i32, i32
  }
}

</mosaic_0001>

<bundles_post_ra>
// kernel: _focal_loss_impl.1
= control target key start
LH: loop header
LB: loop body
LE: loop exit
PB: predicated region body
PF: predicated region fallthrough
CT: control target
= control target key end

     0   :  { %v60_v20 = vmov 0.0   ;;  %s88_s0 = inlined_call_operand.vmem [shape: f32[2,8,128], index: 0, kind: input, shape index: {}]   ;;  %s89_s1 = inlined_call_operand.vmem [shape: s32[8,128], index: 1, kind: input, shape index: {}]   ;;  %s90_s2 = inlined_call_operand.vmem [shape: f32[1,8,128], index: 2, kind: output, shape index: {}]  }
   0x1   :  { %v12_v0 = vld [vmem:[%s88_s0] sm:$0xff]  ;;  %v50_v1 = vld [vmem:[%s88_s0 + $0x8] sm:$0xff] }
   0x2   :  { %v15_v2 = vmax.f32 %v12_v0, %v50_v1  ;;  %v11_v10 = vld [vmem:[%s89_s1] sm:$0xff] }
   0x3   :  { %vm19_vm0 = vcmp.eq.s32.totalorder %v11_v10, 0  ;;  %vm27_vm1 = vcmp.eq.s32.totalorder %v11_v10, 1 }
   0x4   :  { %v16_v3 = vsub.f32 %v12_v0, %v15_v2  ;;  %v24_v4 = vsub.f32 %v50_v1, %v15_v2  ;;  %v22_v11 = vsel %vm19_vm0, %v12_v0, 0.0  ;;  %v23_v21 = vsel %vm19_vm0, 0.25, %v60_v20 }
   0x5   :  { %v30_v13 = vsel %vm27_vm1, %v50_v1, %v22_v11  ;;  %v31_v25 = vsel %vm27_vm1, 0.75, %v23_v21 }
   0x6   :  { %v17_v5 = vmul.f32 1.442695, %v16_v3  ;;  %v25_v6 = vmul.f32 1.442695, %v24_v4  ;;  %v32_v16 = vsub.f32 %v30_v13, %v15_v2 }
   0x8   :  { %52 = vpow2.f32 %v17_v5 }
   0x9   :  { %54 = vpow2.f32 %v25_v6 }
  0x15   :  { %v53_v7 = vpop.eup %52 }
  0x16   :  { %v55_v8 = vpop.eup %54  ;;  %v21_v12 = vsel %vm19_vm0, %v53_v7, 0.0 }
  0x17   :  { %v28_v9 = vadd.f32 %v55_v8, %v53_v7  ;;  %v29_v14 = vsel %vm27_vm1, %v55_v8, %v21_v12 }
  0x19   :  { %56 = vlog2.f32 %v28_v9 }
  0x1a   :  { %58 = vrcp.f32 %v28_v9 }
  0x26   :  { %v57_v15 = vpop.eup %56 }
  0x27   :  { %v59_v17 = vpop.eup %58  ;;  %v34_v18 = vmul.f32 0.6931472, %v57_v15 }
  0x28   :  { %v37_v19 = vmul.f32 %v59_v17, %v29_v14 }
  0x29   :  { %v35_v22 = vsub.f32 %v32_v16, %v34_v18 }
  0x2a   :  { %v38_v23 = vsub.f32 1.0, %v37_v19 }
  0x2b   :  { %v42_v27 = vsub.f32 0.0, %v35_v22 }
  0x2c   :  { %v39_v24 = vmax.f32 %v38_v23, 0.0 }
  0x2e   :  { %v40_v26 = vmul.f32 %v39_v24, %v39_v24 }
  0x30   :  { %v41_v28 = vmul.f32 %v40_v26, %v31_v25 }
  0x32   :  { %v43_v29 = vmul.f32 %v42_v27, %v41_v28 }
  0x34   :  { %45 = vst [vmem:[%s90_s2] sm:$0xff] %v43_v29 }

</bundles_post_ra>
